<compile_context>
chip_gen: v6e
topology: v6e:2x2x1
jax: 0.10.0
libtpu: 0.0.40
codegen_flags: <defaults>
</compile_context>

<pallas_src>
import jax
import jax.numpy as jnp
from jax.experimental import pallas as pl
from jax.experimental.pallas import tpu as pltpu


def _round_up(v: int, m: int) -> int:
    return (v + m - 1) // m * m


def _largest_divisor_multiple(total: int, unit: int, cap: int) -> int:
    """Largest multiple of `unit` that divides `total` and is <= cap.

    Assumes total % unit == 0 and cap >= unit."""
    q = total // unit
    best = 1
    d = 1
    while d * d <= q:
        if q % d == 0:
            for c in (d, q // d):
                if c * unit <= cap and c > best:
                    best = c
        d += 1
    return best * unit


# ----------------------------------------------------------------------------
# Kernel bodies
# ----------------------------------------------------------------------------
def _single_k_kernel(x_ref, w_ref, b_ref, o_ref):
    """Whole K in one tile: no accumulator, no epilogue branching."""
    o_ref[...] = (
        jnp.dot(x_ref[...], w_ref[...], preferred_element_type=jnp.float32)
        + b_ref[...]
    ).astype(o_ref.dtype)


def _make_multi_k_kernel(tk: int, w_resident: bool):
    """K split across grid axis 1 with an f32 VMEM accumulator."""

    def kernel(x_ref, w_ref, b_ref, o_ref, acc_ref):
        k = pl.program_id(1)
        nk = pl.num_programs(1)

        @pl.when(k == 0)
        def _init():
            acc_ref[...] = jnp.zeros_like(acc_ref)

        if w_resident:
            # Weight lives fully in VMEM (fetched once); slice the K-tile.
            start = pl.multiple_of(k * tk, tk)
            w_blk = w_ref[pl.ds(start, tk), :]
        else:
            w_blk = w_ref[...]

        acc_ref[...] += jnp.dot(
            x_ref[...], w_blk, preferred_element_type=jnp.float32
        )

        @pl.when(k == nk - 1)
        def _finalize():
            o_ref[...] = (acc_ref[...] + b_ref[...]).astype(o_ref.dtype)

    return kernel


# ----------------------------------------------------------------------------
# Wrapper
# ----------------------------------------------------------------------------
def flatten_head_forward(x, weight, bias, *, dropout_rate=0.0, tm=None, tk=None):
    """
    x:      [B, F, S, D]
    weight: [S*D, pred_len]   (transposed torch Linear weight)
    bias:   [pred_len]
    returns [B, pred_len, F]
    """
    B, F, S, D = x.shape
    K = S * D
    assert weight.shape[0] == K, (weight.shape, K)
    N = weight.shape[1]
    M = B * F

    x_flat = x.reshape(M, K)
    o_dtype = x.dtype
    x_bytes = jnp.dtype(x_flat.dtype).itemsize
    w_bytes = jnp.dtype(weight.dtype).itemsize
    o_bytes = jnp.dtype(o_dtype).itemsize

    # ---- Generation-aware VMEM budget --------------------------------------
    vmem_cap = 64 * 1024 * 1024  # conservative default (v7x per-TC VMEM)
    try:
        info = pltpu.get_tpu_info()
        cap = getattr(info, "vmem_capacity_bytes", None)
        if cap:
            vmem_cap = int(cap)
    except Exception:
        pass
    vmem_budget = int(vmem_cap * 0.75)  # headroom for compiler scratch

    # ---- K tiling: avoid padding x whenever K is lane-aligned --------------
    if K % 128 == 0:
        k_eff = K  # x is passed unpadded along K
        if tk is None:
            tk_cap = K if K <= 4096 else 2048
        else:
            tk_cap = max(128, min(_round_up(tk, 128), K))
        tk = _largest_divisor_multiple(K, 128, tk_cap)
        k_pad_x = False
    else:
        # Rare fallback: K not a multiple of 128 -> zero-pad x along K
        # (costs one extra HBM pass; zeros are inert against zero-padded W).
        k_eff = _round_up(K, 128)
        if tk is None:
            tk = min(k_eff, 2048) if k_eff > 4096 else k_eff
        tk = max(128, min(_round_up(tk, 128), k_eff))
        k_eff = _round_up(k_eff, tk)
        k_pad_x = True

    nk = k_eff // tk

    # ---- M tiling (no padding; pl.cdiv partial edge block) -----------------
    if tm is None:
        tm = 1024
    if M <= 8:
        tm = M  # single block equal to the full dim
    else:
        tm = max(8, min(_round_up(tm, 8), _round_up(M, 8)))
        # v7x megacore: make the "parallel" M axis at least 2 tiles when possible
        if pl.cdiv(M, tm) < 2:
            tm = max(8, _round_up(pl.cdiv(M, 2), 8))

    n_pad = _round_up(N, 128)  # lane-dense output stores

    # ---- Weight residency + clamp tiles to the VMEM budget ------------------
    w_resident = True
    if nk > 1:
        w_resident = (2 * k_eff * n_pad * w_bytes) <= min(
            24 * 1024 * 1024, vmem_budget // 3
        )

    def working_set(tm_, w_res_):
        ws = 2 * tm_ * tk * x_bytes                      # x tiles (double-buffered)
        ws += (2 * k_eff * n_pad * w_bytes) if w_res_ else (2 * tk * n_pad * w_bytes)
        ws += 2 * n_pad * 4                              # bias
        ws += 2 * tm_ * n_pad * o_bytes                  # output tiles
        if nk > 1:
            ws += tm_ * n_pad * 4                        # f32 accumulator scratch
        return ws

    while working_set(tm, w_resident) > vmem_budget and tm > 8:
        tm = max(8, _round_up(tm // 2, 8))
    if working_set(tm, w_resident) > vmem_budget and w_resident and nk > 1:
        w_resident = False
    ws = working_set(tm, w_resident)
    vmem_limit = min(vmem_budget, max(int(ws * 1.5), 16 * 1024 * 1024))

    # ---- Pad (only) the tiny weight / bias ----------------------------------
    w_p = weight
    if k_eff != K or n_pad != N:
        w_p = jnp.pad(weight, ((0, k_eff - K), (0, n_pad - N)))
    b_p = bias.astype(jnp.float32)
    if n_pad != N:
        b_p = jnp.pad(b_p, (0, n_pad - N))
    b_p = b_p.reshape(1, n_pad)

    x_in = x_flat
    if k_pad_x:
        x_in = jnp.pad(x_flat, ((0, 0), (0, k_eff - K)))

    # ---- pallas_call ---------------------------------------------------------
    if nk == 1:
        grid = (pl.cdiv(M, tm),)
        out_flat = pl.pallas_call(
            _single_k_kernel,
            out_shape=jax.ShapeDtypeStruct((M, n_pad), o_dtype),
            grid_spec=pltpu.PrefetchScalarGridSpec(
                num_scalar_prefetch=0,
                grid=grid,
                in_specs=[
                    pl.BlockSpec((tm, k_eff), lambda i: (i, 0)),     # x
                    pl.BlockSpec((k_eff, n_pad), lambda i: (0, 0)),  # W (resident)
                    pl.BlockSpec((1, n_pad), lambda i: (0, 0)),      # bias
                ],
                out_specs=pl.BlockSpec((tm, n_pad), lambda i: (i, 0)),
                scratch_shapes=[],
            ),
            compiler_params=pltpu.CompilerParams(
                dimension_semantics=("parallel",),
                vmem_limit_bytes=vmem_limit,
            ),
        )(x_in, w_p, b_p)
    else:
        if w_resident:
            w_spec = pl.BlockSpec((k_eff, n_pad), lambda i, k: (0, 0))
        else:
            w_spec = pl.BlockSpec((tk, n_pad), lambda i, k: (k, 0))
        grid = (pl.cdiv(M, tm), nk)
        out_flat = pl.pallas_call(
            _make_multi_k_kernel(tk, w_resident),
            out_shape=jax.ShapeDtypeStruct((M, n_pad), o_dtype),
            grid_spec=pltpu.PrefetchScalarGridSpec(
                num_scalar_prefetch=0,
                grid=grid,
                in_specs=[
                    pl.BlockSpec((tm, tk), lambda i, k: (i, k)),     # x
                    w_spec,                                          # W
                    pl.BlockSpec((1, n_pad), lambda i, k: (0, 0)),   # bias
                ],
                out_specs=pl.BlockSpec((tm, n_pad), lambda i, k: (i, 0)),
                scratch_shapes=[pltpu.VMEM((tm, n_pad), jnp.float32)],
            ),
            compiler_params=pltpu.CompilerParams(
                dimension_semantics=("parallel", "arbitrary"),
                vmem_limit_bytes=vmem_limit,
            ),
        )(x_in, w_p, b_p)

    # Dropout is identity at inference time (module.eval()); no-op here.
    # TODO(synk): training-mode dropout (pltpu.prng_random_bits mask) not implemented.

    out = out_flat[:, :N].reshape(B, F, N)    # [B, F, pred_len]
    # Final permute(0, 2, 1): touches only M*N elements (<< the M*K read inside
    # the kernel) and is left to XLA so it can fuse with the consumer.
    # TODO(synk): emit [B, pred_len, F] directly from the kernel when F >= 128
    # so it can serve as a lane-dense output minor dim.
    return jnp.transpose(out, (0, 2, 1))      # [B, pred_len, F]


def _reference(x, weight, bias):
    B, F, S, D = x.shape
    return jnp.transpose(
        x.reshape(B, F, S * D).astype(jnp.float32) @ weight.astype(jnp.float32)
        + bias.astype(jnp.float32),
        (0, 2, 1),
    )


if __name__ == "__main__":
    # Small shapes consistent with the module's forward signature.
    B, F, S, D = 4, 8, 8, 64        # batch, num_features, seq_len, d_model
    pred_len = 24
    dropout = 0.1                   # inference -> identity

    key = jax.random.PRNGKey(0)
    kx, kw, kb, kx2 = jax.random.split(key, 4)

    bound = 1.0 / (S * D) ** 0.5
    # bf16 activations/weights (memory-bound op -> halve HBM traffic), f32 bias.
    x = jax.random.normal(kx, (B, F, S, D), dtype=jnp.float32).astype(jnp.bfloat16)
    weight = jax.random.uniform(kw, (S * D, pred_len), minval=-bound, maxval=bound,
                                dtype=jnp.float32).astype(jnp.bfloat16)
    bias = jax.random.uniform(kb, (pred_len,), minval=-bound, maxval=bound,
                              dtype=jnp.float32)

    # 1) Default path: single K tile (no accumulator), M split into >=2 tiles.
    out = flatten_head_forward(x, weight, bias, dropout_rate=dropout)
    out = jax.block_until_ready(out)
    ref = _reference(x, weight, bias)
    assert out.shape == (B, pred_len, F), out.shape
    err = jnp.max(jnp.abs(out.astype(jnp.float32) - ref))
    assert err < 5e-2, err

    # 2) Multi-K accumulator path + ragged M edge (M = 15, not a tile multiple).
    B2, F2 = 3, 5
    x2 = jax.random.normal(kx2, (B2, F2, S, D), dtype=jnp.float32).astype(jnp.bfloat16)
    out2 = flatten_head_forward(x2, weight, bias, dropout_rate=dropout, tk=128)
    out2 = jax.block_until_ready(out2)
    ref2 = _reference(x2, weight, bias)
    assert out2.shape == (B2, pred_len, F2), out2.shape
    err2 = jnp.max(jnp.abs(out2.astype(jnp.float32) - ref2))
    assert err2 < 5e-2, err2

    print("KERNEL_OK")
</pallas_src>

<mosaic_0001>
module attributes {stable_mosaic.version = 11 : i64} {
  func.func @_single_k_kernel(%arg0: i32, %arg1: memref<16x512xbf16, #tpu.memory_space<vmem>>, %arg2: memref<512x128xbf16, #tpu.memory_space<vmem>>, %arg3: memref<1x128xf32, #tpu.memory_space<vmem>>, %arg4: memref<16x128xbf16, #tpu.memory_space<vmem>>) attributes {dimension_semantics = [#tpu.dimension_semantics<parallel>], iteration_bounds = array<i64: 2>, scalar_prefetch = 0 : i64, scratch_operands = 0 : i64, tpu.core_type = #tpu.core_type<tc>, window_params = [{transform_indices = @transform_0, window_bounds = array<i64: 16, 512>}, {pipeline_mode = #tpu.pipeline_mode<synchronous>, transform_indices = @transform_1, window_bounds = array<i64: 512, 128>}, {pipeline_mode = #tpu.pipeline_mode<synchronous>, transform_indices = @transform_2, window_bounds = array<i64: 1, 128>}, {transform_indices = @transform_3, window_bounds = array<i64: 16, 128>}]} {
    %c0 = arith.constant 0 : index
    %c0_0 = arith.constant 0 : index
    %0 = vector.load %arg1[%c0, %c0_0] : memref<16x512xbf16, #tpu.memory_space<vmem>>, vector<16x512xbf16>
    %c0_1 = arith.constant 0 : index
    %c0_2 = arith.constant 0 : index
    %1 = vector.load %arg2[%c0_1, %c0_2] : memref<512x128xbf16, #tpu.memory_space<vmem>>, vector<512x128xbf16>
    %cst = arith.constant dense<0.000000e+00> : vector<16x128xf32>
    %2 = tpu.matmul %0, %1, %cst {dimension_numbers = #tpu.dot_dimension_numbers<[1], [0], [0], [1], [0, 0, 1, 1], [], []>} : vector<16x512xbf16>, vector<512x128xbf16>, vector<16x128xf32> -> vector<16x128xf32>
    %c0_3 = arith.constant 0 : index
    %c0_4 = arith.constant 0 : index
    %3 = vector.load %arg3[%c0_3, %c0_4] : memref<1x128xf32, #tpu.memory_space<vmem>>, vector<1x128xf32>
    %4 = vector.broadcast %3 : vector<1x128xf32> to vector<16x128xf32>
    %5 = arith.addf %2, %4 : vector<16x128xf32>
    %6 = arith.truncf %5 : vector<16x128xf32> to vector<16x128xbf16>
    %c0_5 = arith.constant 0 : index
    %c0_6 = arith.constant 0 : index
    %7 = vector.load %arg4[%c0_5, %c0_6] : memref<16x128xbf16, #tpu.memory_space<vmem>>, vector<16x128xbf16>
    tpu.vector_store %arg4[%c0_5, %c0_6], %6 {strides = array<i32>} : memref<16x128xbf16, #tpu.memory_space<vmem>>, vector<16x128xbf16>,
    return
  }
  func.func @transform_0(%arg0: i32) -> (i32, i32) {
    %c0_i32 = arith.constant 0 : i32
    %c0_i32_0 = arith.constant 0 : i32
    return %arg0, %c0_i32 : i32, i32
  }
  func.func @transform_1(%arg0: i32) -> (i32, i32) {
    %c0_i32 = arith.constant 0 : i32
    %c0_i32_0 = arith.constant 0 : i32
    %c0_i32_1 = arith.constant 0 : i32
    return %c0_i32, %c0_i32_0 : i32, i32
  }
  func.func @transform_2(%arg0: i32) -> (i32, i32) {
    %c0_i32 = arith.constant 0 : i32
    %c0_i32_0 = arith.constant 0 : i32
    %c0_i32_1 = arith.constant 0 : i32
    return %c0_i32, %c0_i32_0 : i32, i32
  }
  func.func @transform_3(%arg0: i32) -> (i32, i32) {
    %c0_i32 = arith.constant 0 : i32
    %c0_i32_0 = arith.constant 0 : i32
    return %arg0, %c0_i32 : i32, i32
  }
}

</mosaic_0001>

<bundles_post_ra>
// kernel: tpu_custom_call.1
= control target key start
LH: loop header
LB: loop body
LE: loop exit
PB: predicated region body
PF: predicated region fallthrough
CT: control target
= control target key end

     0   :  { %8 = vsyncpa [#allocation3], 0  ;;  %s1235_s0 = inlined_call_operand.hbm [shape: bf16[32,512], index: 0, kind: input, shape index: {}]   ;;  %s1236_s1 = inlined_call_operand.hbm [shape: bf16[512,128], index: 1, kind: input, shape index: {}]   ;;  %s1237_s2 = inlined_call_operand.vmem [shape: f32[1,128], index: 2, kind: input, shape index: {}]   ;;  %s1238_s3 = inlined_call_operand.hbm [shape: bf16[32,128], index: 3, kind: output, shape index: {}]  }
   0x1   :  { %10 = vsyncpa [#allocation3 + $0x1], 0 }
   0x2   :  { %11 = vsyncpa [#allocation6], 0 }
   0x3   :  { %12 = vsyncpa [#allocation4], 0 }
   0x4   :  { %14 = vsyncpa [#allocation4 + $0x1], 0  ;;  %s1048_s12 = smov 0   ;;  %s1050_s13 = smov 0  }
   0x5   :  { %s1052_s14 = smov 0   ;;  %s1054_s15 = smov 0  }
   0x6 LB: > { %s1069_s16 = sadd.s32 4294967295, %s1017_s15   ;;  %s684_s17 = sadd.s32 4294967294, %s1017_s15   ;;  %s1017_s15 = sphi %s1054_s15, %s1260_s15   ;;  %s1013_s14 = sphi %s1052_s14, %s1259_s14   ;;  %s1009_s13 = sphi %s1050_s13, %s1258_s13   ;;  %s1005_s12 = sphi %s1048_s12, %s1257_s12  }
   0x7   : > { %p40_p0 = scmp.ne.s32.totalorder %s1009_s13, %s1005_s12  ;;  %p1239_p1 = scmp.eq.s32.totalorder %s1069_s16, 0 }
   0x8   : > { %p112_p3 = scmp.eq.s32.totalorder %s684_s17, 1  ;;  %p685_p5 = scmp.ge.s32.totalorder %s1017_s15, 1 }
   0x9   : > { %p1078_p4 = por %p1239_p1, %p40_p0  ;;  %p119_p7 = scmp.lt.s32.totalorder %s1017_s15, 3 }
   0xa   : > { %p1083_p6 = por %p112_p3, %p40_p0  ;;  %s1019_s21 = smov [#allocation5]  }
   0xb   : > { %s1243_s18 = scalar_select %p1078_p4, 1, 0 }
   0xc   : > { %s1244_s19 = scalar_select %p1083_p6, 1, 0 }
   0xd   : > { %p1088_p8 = pnand %p685_p5, %p119_p7  ;;  %s131_s22 = sshll.u32 %s1019_s21, 4  ;;  %s132_s22 = int_to_ptr.vmem [resolvable:$true] %s131_s22 }
   0xe   : > { %s1102_s24 = sadd.s32 1, %s1017_s15   ;;  %s27_s25 = sadd.s32 1, %s1013_s14 }
   0xf   : > { %s1245_s20 = scalar_select %p1088_p8, 1, 0 }
  0x10   : > { %p802_p9 = pneg %p1088_p8  ;;  %s24_s26 = ssub.s32 %s1017_s15, %s1102_s24 }
  0x11   : > { %s906_s27 = scalar_lea.vmem %s132_s22, 4096  ;;  %p914_p5 = scmp.lt.s32.totalorder %s132_s22, %s132_s22 }
  0x12   : > { %p1097_p11 = pnand %p802_p9, %p1239_p1  ;;  %p907_p13 = scmp.ne.s32.totalorder %s132_s22, %s906_s27 }
  0x13   : > { %p915_p7 = scmp.lt.s32.totalorder %s906_s27, %s906_s27 }
  0x14   : > { %p897_p12 = pneg %p1097_p11 }
  0x15   : > { %p916_p10 = por %p915_p7, %p914_p5 }
  0x16   : > { %p909_p0 = pnand %p907_p13, %p897_p12 }
  0x18   : > { %p910_p3 = pneg %p909_p0 }
  0x1a   : > { %p917_p2 = pnand %p916_p10, %p910_p3 }
  0x1c   : > { %920 = shalt.err (!%p917_p2)
}
  0x1d   : > { %s1020_s28 = smov 64   ;;  %s1021_s29 = smov 4  }
  0x1e   : > { %805 = dma.hbm_to_vmem [thread:$0]  (!%p1097_p11), %s1236_s1, 4096, %s132_s22, [#allocation6], %s1020_s28, %s1020_s28, %s1021_s29  }
  0x1f   : > { %p25_p9 = scmp.eq.s32.totalorder %s24_s26, 0  ;;  %p34_p12 = scmp.ne.s32.totalorder %s1013_s14, %s1009_s13 }
  0x20   : > { %p35_p10 = scmp.eq.s32.totalorder %s1017_s15, 0  ;;  %p815_p2 = scmp.lt.s32.totalorder %s1017_s15, 2 }
  0x21   : > { %s1119_s5 = scalar_select %p25_p9, %s1013_s14, %s27_s25  }
  0x22   : > { %p36_p13 = por %p35_p10, %p34_p12  ;;  %p1247_p0 = scmp.eq.s32.totalorder %s1069_s16, 1 }
  0x23   : > { %s148_s7 = sand.u32 1, %s1013_s14   ;;  %s741_s8 = sshll.u32 %s1017_s15, 9 }
  0x24   : > { %p1123_p3 = por %p1247_p0, %p34_p12  ;;  %s688_s9 = sshll.u32 %s148_s7, 5 }
  0x25   : > { %s1132_s17 = scalar_lea.hbm %s1235_s0, %s741_s8  ;;  %s152_s21 = scalar_lea.vmem [#allocation2], %s688_s9 }
  0x26   : > { %s1248_s6 = scalar_select %p1123_p3, 1, 0 }
  0x27   : > { %s160_s22 = sshll.u32 %s152_s21, 4  ;;  %p1134_p11 = pnand %p815_p2, %p36_p13  ;;  %s1138_s22 = int_to_ptr.vmem [resolvable:$true] %s160_s22 }
  0x28   : > { %s1140_s25 = scalar_lea.sflag [#allocation3], %s148_s7  ;;  %s921_s26 = scalar_lea.hbm %s1132_s17, 512 }
  0x29   : > { %p922_p5 = scmp.ne.s32.totalorder %s1132_s17, %s921_s26  ;;  %p923_p7 = pneg %p1134_p11 }
  0x2a   : > { %s926_s29 = scalar_lea.hbm %s1235_s0, 1024  ;;  %p927_p10 = scmp.lt.s32.totalorder %s1132_s17, %s1235_s0 }
  0x2b   : > { %p924_p9 = pnand %p923_p7, %p922_p5  ;;  %p928_p2 = scmp.lt.s32.totalorder %s926_s29, %s921_s26 }
  0x2d   : > { %p925_p12 = pneg %p924_p9  ;;  %p929_p13 = por %p928_p2, %p927_p10 }
  0x2f   : > { %p930_p0 = pnand %p929_p13, %p925_p12 }
  0x31   : > { %933 = shalt.err (!%p930_p0)
}
  0x32   : > { %s934_s7 = scalar_lea.vmem %s1138_s22, 512  ;;  %s1022_s8 = smov [#allocation2]  }
  0x33   : > { %p935_p1 = scmp.ne.s32.totalorder %s1138_s22, %s934_s7  ;;  %s939_s9 = sshll.u32 %s1022_s8, 4  ;;  %s940_s9 = int_to_ptr.vmem [resolvable:$false] %s939_s9 }
  0x34   : > { %s941_s10 = scalar_lea.vmem %s940_s9, 1024  ;;  %p942_p9 = scmp.lt.s32.totalorder %s1138_s22, %s940_s9 }
  0x35   : > { %p937_p6 = pnand %p935_p1, %p923_p7  ;;  %p943_p3 = scmp.lt.s32.totalorder %s941_s10, %s934_s7 }
  0x37   : > { %p938_p5 = pneg %p937_p6  ;;  %p944_p4 = por %p943_p3, %p942_p9 }
  0x39   : > { %p945_p8 = pnand %p944_p4, %p938_p5 }
  0x3b   : > { %948 = shalt.err (!%p945_p8)
}
  0x3c   : > { %s1023_s11 = smov 256   ;;  %s1024_s21 = smov 16  }
  0x3d   : > { %809 = dma.hbm_to_vmem [thread:$0]  (!%p1134_p11), %s1132_s17, 512, %s1138_s22, %s1140_s25, %s1023_s11, %s1023_s11, %s1024_s21  }
  0x3e   : > { %p1250_p1 = scmp.ne.s32.totalorder %s1245_s20, 0 }
  0x3f   : > { %s1164_s26 = sand.u32 (!%p1250_p1), 1, %s1009_s13   ;;  %p1251_p4 = scmp.ne.s32.totalorder (!%p1250_p1), %s1243_s18, 0 }
  0x40   : > { %172 = sbr.rel (%p1250_p1) target bundleno = 328 (0x148), region = 32  ;;  %s693_s27 = sshll.u32 (!%p1250_p1), %s1164_s26, 5 }
  0x41   : > { %s175_s28 = scalar_lea.sflag (!%p1250_p1), [#allocation3], %s1164_s26  ;;  %s1168_s29 = scalar_lea.vmem (!%p1250_p1), [#allocation2], %s693_s27 }
  0x45   : > { %992 = dma.done.wait (%p1251_p4), %s175_s28, 512  }
  0x46   : > { %994 = vsyncadd (%p1251_p4), %s175_s28, 4294966784  ;;  %p1252_p6 = scmp.eq.s32.totalorder %s1069_s16, 0 }
  0x48   : > { %996 = dma.done.wait (%p1252_p6), [#allocation6], 4096   ;;  %p1253_p8 = pmov %p1252_p6 }
  0x49   : > { %v857_v0 = vld [vmem:[#allocation5 + $0x78] sm:$0xff]   ;;  %v861_v4 = vld [vmem:[#allocation5 + $0x70] sm:$0xff]   ;;  %v865_v8 = vld [vmem:[#allocation5 + $0x68] sm:$0xff]   ;;  %s695_s18 = sshll.u32 %s1164_s26, 3  ;;  %s744_s22 = sshll.u32 %s1069_s16, 7 }
  0x4a   : > { %998 = vsyncadd (%p1253_p8), [#allocation6], 4294963200  ;;  %v858_v1 = vld [vmem:[#allocation5 + $0xf8] sm:$0xff]   ;;  %750 = vmatprep.subr.bf16.mxu0 %v857_v0  ;;  %v862_v5 = vld [vmem:[#allocation5 + $0xf0] sm:$0xff]   ;;  %s204_s23 = scalar_lea.vmem [#allocation7], %s695_s18  ;;  %s1190_s7 = scalar_lea.hbm %s1238_s3, %s744_s22 }
  0x4b   : > { %v859_v2 = vld [vmem:[#allocation5 + $0x38] sm:$0xff]   ;;  %772 = vmatprep.subr.bf16.mxu1 %v858_v1  ;;  %v863_v6 = vld [vmem:[#allocation5 + $0x30] sm:$0xff]   ;;  %v866_v9 = vld [vmem:[#allocation5 + $0xe8] sm:$0xff]   ;;  %s601_s25 = sshll.u32 %s204_s23, 4  ;;  %s588_s8 = scalar_lea.sflag [#allocation4], %s1164_s26  ;;  %s1192_s25 = int_to_ptr.vmem [resolvable:$true] %s601_s25 }
  0x4c   : > { %v860_v3 = vld [vmem:[#allocation5 + $0xb8] sm:$0xff]   ;;  %751 = vmatpush3.bf16.msra.mxu0 %v859_v2  ;;  %v864_v7 = vld [vmem:[#allocation5 + $0xb0] sm:$0xff]   ;;  %v867_v10 = vld [vmem:[#allocation5 + $0x28] sm:$0xff]   ;;  %s949_s9 = scalar_lea.vmem %s1192_s25, 128  ;;  %p1254_p11 = scmp.ne.s32.totalorder %s1248_s6, 0 }
  0x4d   : > { %773 = vmatpush3.bf16.msra.mxu1 %v860_v3  ;;  %752 = vmatprep.subr.bf16.mxu0 %v861_v4  ;;  %v868_v11 = vld [vmem:[#allocation5 + $0xa8] sm:$0xff]   ;;  %v869_v12 = vld [vmem:[#allocation5 + $0x60] sm:$0xff]   ;;  %v873_v16 = vld [vmem:[#allocation5 + $0x58] sm:$0xff]   ;;  %p950_p3 = scmp.ne.s32.totalorder %s1192_s25, %s949_s9  ;;  %s1025_s16 = smov [#allocation7]  }
  0x4e   : > { %774 = vmatprep.subr.bf16.mxu1 %v862_v5  ;;  %v870_v13 = vld [vmem:[#allocation5 + $0xe0] sm:$0xff]   ;;  %v874_v17 = vld [vmem:[#allocation5 + $0xd8] sm:$0xff]   ;;  %v877_v20 = vld [vmem:[#allocation5 + $0x50] sm:$0xff]   ;;  %s953_s10 = sshll.u32 %s1025_s16, 4  ;;  %s954_s10 = int_to_ptr.vmem [resolvable:$false] %s953_s10 }
  0x4f   : > { %v871_v14 = vld [vmem:[#allocation5 + $0x20] sm:$0xff]   ;;  %v875_v18 = vld [vmem:[#allocation5 + $0x18] sm:$0xff]   ;;  %v878_v21 = vld [vmem:[#allocation5 + $0xd0] sm:$0xff]   ;;  %p951_p7 = pnand %p950_p3, %p1254_p11  ;;  %s955_s11 = scalar_lea.vmem %s954_s10, 256 }
  0x50   : > { %753 = vmatpush3.bf16.msra.mxu0 %v863_v6  ;;  %v872_v15 = vld [vmem:[#allocation5 + $0xa0] sm:$0xff]   ;;  %v876_v19 = vld [vmem:[#allocation5 + $0x98] sm:$0xff]   ;;  %v879_v22 = vld [vmem:[#allocation5 + $0x10] sm:$0xff]   ;;  %p956_p10 = scmp.lt.s32.totalorder %s1192_s25, %s954_s10  ;;  %p957_p2 = scmp.lt.s32.totalorder %s955_s11, %s949_s9 }
  0x51   : > { %775 = vmatpush3.bf16.msra.mxu1 %v864_v7  ;;  %754 = vmatprep.subr.bf16.mxu0 %v865_v8  ;;  %v880_v23 = vld [vmem:[#allocation5 + $0x90] sm:$0xff]   ;;  %v881_v24 = vld [vmem:[#allocation5 + $0x48] sm:$0xff]   ;;  %v885_v28 = vld [vmem:[#allocation5 + $0x40] sm:$0xff]   ;;  %p952_p12 = pneg %p951_p7 }
  0x52   : > { %776 = vmatprep.subr.bf16.mxu1 %v866_v9  ;;  %v882_v25 = vld [vmem:[#allocation5 + $0xc8] sm:$0xff]   ;;  %v886_v29 = vld [vmem:[#allocation5 + $0xc0] sm:$0xff]   ;;  %p958_p13 = por %p957_p2, %p956_p10 }
  0x53   : > { %v883_v26 = vld [vmem:[#allocation5 + $0x8] sm:$0xff]   ;;  %v887_v30 = vld [vmem:[#allocation5] sm:$0xff]  }
  0x54   : > { %755 = vmatpush3.bf16.msra.mxu0 %v867_v10  ;;  %v884_v27 = vld [vmem:[#allocation5 + $0x88] sm:$0xff]   ;;  %v888_v31 = vld [vmem:[#allocation5 + $0x80] sm:$0xff]   ;;  %p959_p0 = pnand %p958_p13, %p952_p12 }
  0x55   : > { %777 = vmatpush3.bf16.msra.mxu1 %v868_v11  ;;  %756 = vmatprep.subr.bf16.mxu0 %v869_v12  ;;  %v889_v32 = vld [vmem:[%s1168_s29] ss:$16 sps:$4 sm:$0xff]   ;;  %v891_v33 = vld [vmem:[%s1168_s29 + $0x4] ss:$16 sps:$4 sm:$0xff]   ;;  %v892_v34 = vld [vmem:[%s1168_s29 + $0x8] ss:$16 sps:$4 sm:$0xff]  }
  0x56   : > { %778 = vmatprep.subr.bf16.mxu1 %v870_v13  ;;  %v894_v35 = vld [vmem:[%s1168_s29 + $0xc] ss:$16 sps:$4 sm:$0xff]   ;;  %527 = vmatprep.mubr.bf16.mxu0 %v891_v33  ;;  %v696_v41 = vld [vmem:[%s1237_s2] ss:$0 sm:$0xff] }
  0x57   : > { %568 = vmatprep.mubr.bf16.mxu1 %v894_v35 }
  0x58   : > { %757 = vmatpush3.bf16.msra.mxu0 %v871_v14 }
  0x59   : > { %779 = vmatpush3.bf16.msra.mxu1 %v872_v15  ;;  %758 = vmatprep.subr.bf16.mxu0 %v873_v16 }
  0x5a   : > { %780 = vmatprep.subr.bf16.mxu1 %v874_v17 }
  0x5c   : > { %759 = vmatpush3.bf16.msra.mxu0 %v875_v18 }
  0x5d   : > { %781 = vmatpush3.bf16.msra.mxu1 %v876_v19  ;;  %760 = vmatprep.subr.bf16.mxu0 %v877_v20 }
  0x5e   : > { %782 = vmatprep.subr.bf16.mxu1 %v878_v21 }
  0x60   : > { %761 = vmatpush3.bf16.msra.mxu0 %v879_v22 }
  0x61   : > { %783 = vmatpush3.bf16.msra.mxu1 %v880_v23  ;;  %762 = vmatprep.subr.bf16.mxu0 %v881_v24 }
  0x62   : > { %784 = vmatprep.subr.bf16.mxu1 %v882_v25 }
  0x64   : > { %763 = vmatpush3.bf16.msra.mxu0 %v883_v26 }
  0x65   : > { %785 = vmatpush3.bf16.msra.mxu1 %v884_v27  ;;  %764 = vmatprep.subr.bf16.mxu0 %v885_v28 }
  0x66   : > { %786 = vmatprep.subr.bf16.mxu1 %v886_v29 }
  0x68   : > { %765 = vmatpush3.bf16.msra.mxu0 %v887_v30 }
  0x69   : > { %787 = vmatpush3.bf16.msra.mxu1 %v888_v31 }
  0x6b   : > { %528 = vmatmul.mubr.bf16.vlgmr.msra.gmra.mxu0 %v889_v32 }
  0x6c   : > { %569 = vmatmul.mubr.bf16.vlgmr.msra.gmra.mxu1 %v892_v34 }
 0x12b   : > { %v766_v36 = vpop.f32.mrf.mxu0 }
 0x12c   : > { %v788_v37 = vpop.f32.mrf.mxu1 }
 0x12d   : > { %v767_v38 = vpop.f32.mrf.mxu0 }
 0x12e   : > { %v768_v39 = vadd.f32 %v767_v38, %v766_v36  ;;  %v789_v40 = vpop.f32.mrf.mxu1 }
 0x12f   : > { %v769_v42 = vpop.f32.mrf.mxu0  ;;  %v790_v48 = vadd.f32 %v789_v40, %v788_v37 }
 0x130   : > { %v791_v43 = vpop.f32.mrf.mxu1  ;;  %v530_v45 = vadd.f32 %v768_v39, %v696_v41 }
 0x131   : > { %v770_v44 = vpop.f32.mrf.mxu0 }
 0x132   : > { %v771_v46 = vadd.f32 %v770_v44, %v769_v42  ;;  %v792_v47 = vpop.f32.mrf.mxu1  ;;  %v571_v51 = vadd.f32 %v790_v48, %v530_v45 }
 0x133   : > { %v793_v50 = vadd.f32 %v792_v47, %v791_v43 }
 0x134   : > { %v533_v49 = vadd.f32 %v771_v46, %v696_v41 }
 0x136   : > { %v574_v52 = vadd.f32 %v793_v50, %v533_v49 }
 0x138   : > { %v748_v53 = vpack.c.bf16 %v574_v52, %v571_v51 }
 0x13a   : > { %749 = vst [vmem:[%s204_s23] sm:$0xff] %v748_v53  }
 0x13b   : > { %962 = shalt.err (!%p959_p0)
}
 0x13c   : > { %s963_s21 = scalar_lea.hbm %s1190_s7, 128  ;;  %s967_s29 = scalar_lea.hbm %s1238_s3, 256 }
 0x13d   : > { %p964_p5 = scmp.ne.s32.totalorder %s1190_s7, %s963_s21  ;;  %p968_p4 = scmp.lt.s32.totalorder %s1190_s7, %s1238_s3 }
 0x13e   : > { %p969_p6 = scmp.lt.s32.totalorder %s967_s29, %s963_s21 }
 0x13f   : > { %p965_p9 = pnand %p964_p5, %p1254_p11 }
 0x140   : > { %p970_p8 = por %p969_p6, %p968_p4 }
 0x141   : > { %p966_p1 = pneg %p965_p9 }
 0x143   : > { %p971_p3 = pnand %p970_p8, %p966_p1 }
 0x145   : > { %974 = shalt.err (!%p971_p3)
}
 0x146   : > { %s1026_s17 = smov 64   ;;  %s1027_s22 = smov 4  }
 0x147   : > { %800 = dma.vmem_to_hbm [thread:$0]  (%p1254_p11), %s1192_s25, 128, %s1190_s7, %s588_s8, %s1026_s17, %s1026_s17, %s1027_s22  }
 0x148 PF: > { %s616_s23 = sand.u32 1, %s1005_s12   ;;  %p1255_p7 = scmp.ne.s32.totalorder %s1244_s19, 0 }
 0x149   : > { %p1256_p12 = scmp.ge.s32.totalorder %s1017_s15, 2  ;;  %s617_s30 = scalar_lea.sflag [#allocation4], %s616_s23 }
 0x14b   : > { %p811_p10 = pnand %p1256_p12, %p1255_p7 }
 0x14d   : > { %p812_p2 = pneg %p811_p10 }
 0x14f   : > { %1000 = dma.done.wait (%p812_p2), %s617_s30, 128  }
 0x150   : > { %1002 = vsyncadd (%p812_p2), %s617_s30, 4294967168  ;;  %p17_p13 = scmp.ge.s32.totalorder %s1102_s24, 4   ;;  %s1257_s12 = smov %s1009_s13 }
 0x151   : > { %s1258_s13 = smov %s1013_s14  ;;  %s1259_s14 = smov %s1119_s5 }
 0x152   : > { %s1260_s15 = smov %s1102_s24  ;;  %19 = sbr.rel (!%p17_p13) target bundleno = 6 (0x6), region = 81 }
 0x157   :  { %622 = vsyncpa [#allocation3], 1 }
 0x158   :  { %624 = vsyncpa [#allocation3 + $0x1], 1 }
 0x159   :  { %625 = vsyncpa [#allocation6], 1 }
 0x15a   :  { %626 = vsyncpa [#allocation4], 1 }
 0x15b   :  { %628 = vsyncpa [#allocation4 + $0x1], 1 }

</bundles_post_ra>
